<compile_context>
chip_gen: v6e
topology: v6e:2x2x1
jax: 0.10.0
libtpu: 0.0.40
codegen_flags: <defaults>
</compile_context>

<pallas_src>
import functools

import jax
import jax.numpy as jnp
from jax.experimental import pallas as pl
from jax.experimental.pallas import tpu as pltpu


# ----------------------------- Pallas kernel -------------------------------

def _cvae_kernel(
    # batch-tiled inputs
    x_ref, y_ref, eps_ref,
    # fused encoder params (mu|logvar concatenated / block-diagonal)
    enc_w1y, x_all_w, enc_b1,
    enc_w2, enc_b2,
    enc_w3, enc_b3,
    # decoder params (layer-1 split into sample-part; x-part lives in x_all_w)
    dec_w1s, dec_b1,
    dec_w2, dec_b2,
    dec_w3, dec_b3,
    # outputs
    mean_dec_ref, enc_out_ref,
    *, hidden_dim, z_dim,
):
    f32 = jnp.float32
    x = x_ref[...]        # (TB, c)
    y = y_ref[...]        # (TB, image_size)
    eps = eps_ref[...]    # (TB, z_dim)

    def dot(a, w_ref):
        w = w_ref[...]
        # cast the activation to the (possibly bf16) weight dtype; accumulate f32
        return jnp.dot(a.astype(w.dtype), w, preferred_element_type=f32)

    # One fused (TB, c) @ (c, 3H) projection of the conditioning variables,
    # shared by the mu head, the logvar head and the decoder's first layer.
    xp = dot(x, x_all_w)                       # (TB, 3H)
    xp_enc = xp[:, : 2 * hidden_dim]           # (TB, 2H)  -> mu | logvar parts
    xp_dec = xp[:, 2 * hidden_dim:]            # (TB, H)   -> decoder part

    # ---- Encoder: mu and logvar heads fused into one wide MLP -------------
    h = jnp.tanh(dot(y, enc_w1y) + xp_enc + enc_b1[...])        # (TB, 2H)
    h = jnp.tanh(dot(h, enc_w2) + enc_b2[...])                  # (TB, 2H)
    enc = dot(h, enc_w3) + enc_b3[...]                          # (TB, 2Z)
    mean = enc[:, :z_dim]
    logvar = enc[:, z_dim:]

    # ---- Reparameterization: sample = mean + eps * exp(0.5 * logvar) ------
    sample = mean + eps * jnp.exp(0.5 * logvar)

    # ---- Decoder on z = cat(sample, x), sigmoid output ---------------------
    h = jnp.tanh(dot(sample, dec_w1s) + xp_dec + dec_b1[...])   # (TB, H)
    h = jnp.tanh(dot(h, dec_w2) + dec_b2[...])                  # (TB, H)
    dec = dot(h, dec_w3) + dec_b3[...]                          # (TB, image_size)

    mean_dec_ref[...] = jax.nn.sigmoid(dec)
    enc_out_ref[...] = enc                                       # packed mean|logvar


# ------------------------------ JAX wrapper --------------------------------

def init_cvae_params(key, image_size, hidden_dim, z_dim, c):
    """Synthetic parameter init, shapes matching the torch module.

    Weights are stored (in, out) i.e. already transposed vs. torch's (out, in).
    First-layer weights of each MLP are split into the main-input part and the
    conditioning-variable part to implement torch.cat exactly.
    """
    def dense(k, fan_in, fan_out):
        kw, kb = jax.random.split(k)
        lim = 1.0 / jnp.sqrt(jnp.float32(fan_in))
        w = jax.random.uniform(kw, (fan_in, fan_out), jnp.float32, -lim, lim)
        b = jax.random.uniform(kb, (1, fan_out), jnp.float32, -lim, lim)
        return w, b

    keys = jax.random.split(key, 9)
    params = {}

    # Encoder mu head: (image_size + c) -> hidden -> hidden -> z_dim
    w1, b1 = dense(keys[0], image_size + c, hidden_dim)
    w2, b2 = dense(keys[1], hidden_dim, hidden_dim)
    w3, b3 = dense(keys[2], hidden_dim, z_dim)
    params["mu"] = (w1[:image_size], w1[image_size:], b1, w2, b2, w3, b3)

    # Encoder logvar head
    w1, b1 = dense(keys[3], image_size + c, hidden_dim)
    w2, b2 = dense(keys[4], hidden_dim, hidden_dim)
    w3, b3 = dense(keys[5], hidden_dim, z_dim)
    params["lv"] = (w1[:image_size], w1[image_size:], b1, w2, b2, w3, b3)

    # Decoder: (z_dim + c) -> hidden -> hidden -> image_size
    w1, b1 = dense(keys[6], z_dim + c, hidden_dim)
    w2, b2 = dense(keys[7], hidden_dim, hidden_dim)
    w3, b3 = dense(keys[8], z_dim=None, fan_in=hidden_dim, fan_out=image_size) \
        if False else dense(keys[8], hidden_dim, image_size)
    params["de"] = (w1[:z_dim], w1[z_dim:], b1, w2, b2, w3, b3)

    return params


def _fuse_params(params, weight_dtype):
    """Build the fused/stacked weight matrices consumed by the kernel."""
    mu_w1y, mu_w1x, mu_b1, mu_w2, mu_b2, mu_w3, mu_b3 = params["mu"]
    lv_w1y, lv_w1x, lv_b1, lv_w2, lv_b2, lv_w3, lv_b3 = params["lv"]
    de_w1s, de_w1x, de_b1, de_w2, de_b2, de_w3, de_b3 = params["de"]

    H = mu_w2.shape[0]
    Z = mu_w3.shape[1]
    z_hh = jnp.zeros((H, H), jnp.float32)
    z_hz = jnp.zeros((H, Z), jnp.float32)

    enc_w1y = jnp.concatenate([mu_w1y, lv_w1y], axis=1)             # (img, 2H)
    x_all_w = jnp.concatenate([mu_w1x, lv_w1x, de_w1x], axis=1)     # (c, 3H)
    enc_b1 = jnp.concatenate([mu_b1, lv_b1], axis=1)                # (1, 2H)
    enc_w2 = jnp.block([[mu_w2, z_hh], [z_hh, lv_w2]])              # (2H, 2H)
    enc_b2 = jnp.concatenate([mu_b2, lv_b2], axis=1)                # (1, 2H)
    enc_w3 = jnp.block([[mu_w3, z_hz], [z_hz, lv_w3]])              # (2H, 2Z)
    enc_b3 = jnp.concatenate([mu_b3, lv_b3], axis=1)                # (1, 2Z)

    cast = lambda w: w.astype(weight_dtype)   # matmul operands only; biases stay f32
    return [
        cast(enc_w1y), cast(x_all_w), enc_b1,
        cast(enc_w2), enc_b2,
        cast(enc_w3), enc_b3,
        cast(de_w1s), de_b1,
        cast(de_w2), de_b2,
        cast(de_w3), de_b3,
    ]


@functools.partial(jax.jit, static_argnames=("tile_b", "weight_dtype"))
def cvae_forward(x, y, eps, params, *, tile_b=None, weight_dtype=jnp.float32):
    """x: (B, c) conditioning vars, y: (B, image_size) spectra,
    eps: (B, z_dim) standard-normal sample.  Returns (mean_dec, mean, logvar)."""
    B, c = x.shape
    image_size = y.shape[1]
    z_dim = eps.shape[1]
    hidden_dim = params["mu"][3].shape[0]

    # Full-batch tile when B is small (grid=(1,)); >=256-row tiles if B is huge.
    if tile_b is None:
        tile_b = B if B <= 256 else 256
    assert B % tile_b == 0
    grid = (B // tile_b,)

    weights = _fuse_params(params, weight_dtype)

    def batch_spec(feat):
        # feature axes are never tiled -> last dim always equals the full dim
        return pl.BlockSpec((tile_b, feat), lambda i: (i, 0))

    def full_spec(arr):
        return pl.BlockSpec(arr.shape, lambda i: (0, 0))

    in_specs = (
        [batch_spec(c), batch_spec(image_size), batch_spec(z_dim)]
        + [full_spec(w) for w in weights]
    )
    out_specs = [
        batch_spec(image_size),       # mean_dec (lane-dense)
        batch_spec(2 * z_dim),        # packed mean|logvar
    ]
    out_shape = (
        jax.ShapeDtypeStruct((B, image_size), jnp.float32),
        jax.ShapeDtypeStruct((B, 2 * z_dim), jnp.float32),
    )

    # Advisory cost estimate so XLA can schedule around this tiny kernel.
    H2 = 2 * hidden_dim
    flops = 2 * B * (
        image_size * H2 + c * 3 * hidden_dim          # fused encoder L1 + x-proj
        + H2 * H2 + H2 * 2 * z_dim                    # fused encoder L2, L3
        + z_dim * hidden_dim + hidden_dim * hidden_dim
        + hidden_dim * image_size                     # decoder L1..L3
    )
    transcendentals = B * (6 * hidden_dim + z_dim + image_size)
    bytes_accessed = (
        4 * (x.size + y.size + eps.size)
        + sum(int(w.size) * w.dtype.itemsize for w in weights)
        + 4 * (B * image_size + B * 2 * z_dim)
    )

    kernel = functools.partial(_cvae_kernel, hidden_dim=hidden_dim, z_dim=z_dim)

    mean_dec, enc_out = pl.pallas_call(
        kernel,
        out_shape=out_shape,
        grid_spec=pltpu.PrefetchScalarGridSpec(
            num_scalar_prefetch=0,
            grid=grid,
            in_specs=in_specs,
            out_specs=out_specs,
        ),
        compiler_params=pltpu.CompilerParams(
            dimension_semantics=("parallel",)),
        cost_estimate=pl.CostEstimate(
            flops=flops,
            transcendentals=transcendentals,
            bytes_accessed=bytes_accessed),
    )(x, y, eps, *weights)

    mean = enc_out[:, :z_dim]
    logvar = enc_out[:, z_dim:]
    return mean_dec, mean, logvar


# --------------------------------- main -------------------------------------

if __name__ == "__main__":
    # Small, TPU-friendly shapes consistent with the module's forward:
    #   x: (B, c) conditioning vars; y: (B, image_size) spectra.
    B, image_size, hidden_dim, z_dim, c = 16, 256, 128, 16, 4

    key = jax.random.PRNGKey(0)
    kx, ky, keps, kparam = jax.random.split(key, 4)

    x = jax.random.normal(kx, (B, c), jnp.float32)
    y = jax.random.uniform(ky, (B, image_size), jnp.float32)
    eps = jax.random.normal(keps, (B, z_dim), jnp.float32)  # torch.randn_like(std)

    params = init_cvae_params(kparam, image_size, hidden_dim, z_dim, c)

    # weight_dtype=jnp.bfloat16 is recommended on v6e/v7x to halve weight DMA;
    # f32 here so the reference check is bit-tight.
    mean_dec, mean, logvar = cvae_forward(x, y, eps, params)
    jax.block_until_ready((mean_dec, mean, logvar))

    # Pure-JAX reference of the same math (unfused weights).
    def ref():
        def mlp3(a, b, p, act_last):
            wa, wb, b1, w2, b2, w3, b3 = p
            h = jnp.tanh(a @ wa + b @ wb + b1)
            h = jnp.tanh(h @ w2 + b2)
            o = h @ w3 + b3
            return jax.nn.sigmoid(o) if act_last else o
        m = mlp3(y, x, params["mu"], False)
        lv = mlp3(y, x, params["lv"], False)
        s = m + eps * jnp.exp(0.5 * lv)
        md = mlp3(s, x, params["de"], True)
        return md, m, lv

    rd, rm, rlv = ref()
    assert jnp.allclose(mean_dec, rd, atol=2e-5), float(jnp.abs(mean_dec - rd).max())
    assert jnp.allclose(mean, rm, atol=2e-5), float(jnp.abs(mean - rm).max())
    assert jnp.allclose(logvar, rlv, atol=2e-5), float(jnp.abs(logvar - rlv).max())
    assert mean_dec.shape == (B, image_size) and mean.shape == (B, z_dim)

    print("KERNEL_OK")
</pallas_src>

<mosaic_0001>
module attributes {stable_mosaic.version = 11 : i64} {
  func.func @_cvae_kernel(%arg0: i32, %arg1: memref<16x4xf32, #tpu.memory_space<vmem>>, %arg2: memref<16x256xf32, #tpu.memory_space<vmem>>, %arg3: memref<16x16xf32, #tpu.memory_space<vmem>>, %arg4: memref<256x256xf32, #tpu.memory_space<vmem>>, %arg5: memref<4x384xf32, #tpu.memory_space<vmem>>, %arg6: memref<1x256xf32, #tpu.memory_space<vmem>>, %arg7: memref<256x256xf32, #tpu.memory_space<vmem>>, %arg8: memref<1x256xf32, #tpu.memory_space<vmem>>, %arg9: memref<256x32xf32, #tpu.memory_space<vmem>>, %arg10: memref<1x32xf32, #tpu.memory_space<vmem>>, %arg11: memref<16x128xf32, #tpu.memory_space<vmem>>, %arg12: memref<1x128xf32, #tpu.memory_space<vmem>>, %arg13: memref<128x128xf32, #tpu.memory_space<vmem>>, %arg14: memref<1x128xf32, #tpu.memory_space<vmem>>, %arg15: memref<128x256xf32, #tpu.memory_space<vmem>>, %arg16: memref<1x256xf32, #tpu.memory_space<vmem>>, %arg17: memref<16x256xf32, #tpu.memory_space<vmem>>, %arg18: memref<16x32xf32, #tpu.memory_space<vmem>>) attributes {dimension_semantics = [#tpu.dimension_semantics<parallel>], iteration_bounds = array<i64: 1>, scalar_prefetch = 0 : i64, scratch_operands = 0 : i64, tpu.core_type = #tpu.core_type<tc>, window_params = [{transform_indices = @transform_0, window_bounds = array<i64: 16, 4>}, {transform_indices = @transform_1, window_bounds = array<i64: 16, 256>}, {transform_indices = @transform_2, window_bounds = array<i64: 16, 16>}, {pipeline_mode = #tpu.pipeline_mode<synchronous>, transform_indices = @transform_3, window_bounds = array<i64: 256, 256>}, {pipeline_mode = #tpu.pipeline_mode<synchronous>, transform_indices = @transform_4, window_bounds = array<i64: 4, 384>}, {pipeline_mode = #tpu.pipeline_mode<synchronous>, transform_indices = @transform_5, window_bounds = array<i64: 1, 256>}, {pipeline_mode = #tpu.pipeline_mode<synchronous>, transform_indices = @transform_6, window_bounds = array<i64: 256, 256>}, {pipeline_mode = #tpu.pipeline_mode<synchronous>, transform_indices = @transform_7, window_bounds = array<i64: 1, 256>}, {pipeline_mode = #tpu.pipeline_mode<synchronous>, transform_indices = @transform_8, window_bounds = array<i64: 256, 32>}, {pipeline_mode = #tpu.pipeline_mode<synchronous>, transform_indices = @transform_9, window_bounds = array<i64: 1, 32>}, {pipeline_mode = #tpu.pipeline_mode<synchronous>, transform_indices = @transform_10, window_bounds = array<i64: 16, 128>}, {pipeline_mode = #tpu.pipeline_mode<synchronous>, transform_indices = @transform_11, window_bounds = array<i64: 1, 128>}, {pipeline_mode = #tpu.pipeline_mode<synchronous>, transform_indices = @transform_12, window_bounds = array<i64: 128, 128>}, {pipeline_mode = #tpu.pipeline_mode<synchronous>, transform_indices = @transform_13, window_bounds = array<i64: 1, 128>}, {pipeline_mode = #tpu.pipeline_mode<synchronous>, transform_indices = @transform_14, window_bounds = array<i64: 128, 256>}, {pipeline_mode = #tpu.pipeline_mode<synchronous>, transform_indices = @transform_15, window_bounds = array<i64: 1, 256>}, {transform_indices = @transform_16, window_bounds = array<i64: 16, 256>}, {transform_indices = @transform_17, window_bounds = array<i64: 16, 32>}]} {
    %c0 = arith.constant 0 : index
    %c0_0 = arith.constant 0 : index
    %0 = vector.load %arg1[%c0, %c0_0] : memref<16x4xf32, #tpu.memory_space<vmem>>, vector<16x4xf32>
    %c0_1 = arith.constant 0 : index
    %c0_2 = arith.constant 0 : index
    %1 = vector.load %arg2[%c0_1, %c0_2] : memref<16x256xf32, #tpu.memory_space<vmem>>, vector<16x256xf32>
    %c0_3 = arith.constant 0 : index
    %c0_4 = arith.constant 0 : index
    %2 = vector.load %arg3[%c0_3, %c0_4] : memref<16x16xf32, #tpu.memory_space<vmem>>, vector<16x16xf32>
    %c0_5 = arith.constant 0 : index
    %c0_6 = arith.constant 0 : index
    %3 = vector.load %arg5[%c0_5, %c0_6] : memref<4x384xf32, #tpu.memory_space<vmem>>, vector<4x384xf32>
    %cst = arith.constant dense<0.000000e+00> : vector<16x384xf32>
    %4 = tpu.matmul %0, %3, %cst {dimension_numbers = #tpu.dot_dimension_numbers<[1], [0], [0], [1], [0, 0, 1, 1], [], []>} : vector<16x4xf32>, vector<4x384xf32>, vector<16x384xf32> -> vector<16x384xf32>
    %5 = vector.extract_strided_slice %4 {offsets = [0, 0], sizes = [16, 256], strides = [1, 1]} : vector<16x384xf32> to vector<16x256xf32>
    %6 = vector.extract_strided_slice %4 {offsets = [0, 256], sizes = [16, 128], strides = [1, 1]} : vector<16x384xf32> to vector<16x128xf32>
    %c0_7 = arith.constant 0 : index
    %c0_8 = arith.constant 0 : index
    %7 = vector.load %arg4[%c0_7, %c0_8] : memref<256x256xf32, #tpu.memory_space<vmem>>, vector<256x256xf32>
    %cst_9 = arith.constant dense<0.000000e+00> : vector<16x256xf32>
    %8 = tpu.matmul %1, %7, %cst_9 {dimension_numbers = #tpu.dot_dimension_numbers<[1], [0], [0], [1], [0, 0, 1, 1], [], []>} : vector<16x256xf32>, vector<256x256xf32>, vector<16x256xf32> -> vector<16x256xf32>
    %9 = arith.addf %8, %5 : vector<16x256xf32>
    %c0_10 = arith.constant 0 : index
    %c0_11 = arith.constant 0 : index
    %10 = vector.load %arg6[%c0_10, %c0_11] : memref<1x256xf32, #tpu.memory_space<vmem>>, vector<1x256xf32>
    %11 = vector.broadcast %10 : vector<1x256xf32> to vector<16x256xf32>
    %12 = arith.addf %9, %11 : vector<16x256xf32>
    %13 = math.tanh %12 : vector<16x256xf32>
    %c0_12 = arith.constant 0 : index
    %c0_13 = arith.constant 0 : index
    %14 = vector.load %arg7[%c0_12, %c0_13] : memref<256x256xf32, #tpu.memory_space<vmem>>, vector<256x256xf32>
    %cst_14 = arith.constant dense<0.000000e+00> : vector<16x256xf32>
    %15 = tpu.matmul %13, %14, %cst_14 {dimension_numbers = #tpu.dot_dimension_numbers<[1], [0], [0], [1], [0, 0, 1, 1], [], []>} : vector<16x256xf32>, vector<256x256xf32>, vector<16x256xf32> -> vector<16x256xf32>
    %c0_15 = arith.constant 0 : index
    %c0_16 = arith.constant 0 : index
    %16 = vector.load %arg8[%c0_15, %c0_16] : memref<1x256xf32, #tpu.memory_space<vmem>>, vector<1x256xf32>
    %17 = vector.broadcast %16 : vector<1x256xf32> to vector<16x256xf32>
    %18 = arith.addf %15, %17 : vector<16x256xf32>
    %19 = math.tanh %18 : vector<16x256xf32>
    %c0_17 = arith.constant 0 : index
    %c0_18 = arith.constant 0 : index
    %20 = vector.load %arg9[%c0_17, %c0_18] : memref<256x32xf32, #tpu.memory_space<vmem>>, vector<256x32xf32>
    %cst_19 = arith.constant dense<0.000000e+00> : vector<16x32xf32>
    %21 = tpu.matmul %19, %20, %cst_19 {dimension_numbers = #tpu.dot_dimension_numbers<[1], [0], [0], [1], [0, 0, 1, 1], [], []>} : vector<16x256xf32>, vector<256x32xf32>, vector<16x32xf32> -> vector<16x32xf32>
    %c0_20 = arith.constant 0 : index
    %c0_21 = arith.constant 0 : index
    %22 = vector.load %arg10[%c0_20, %c0_21] : memref<1x32xf32, #tpu.memory_space<vmem>>, vector<1x32xf32>
    %23 = vector.broadcast %22 : vector<1x32xf32> to vector<16x32xf32>
    %24 = arith.addf %21, %23 : vector<16x32xf32>
    %25 = vector.extract_strided_slice %24 {offsets = [0, 0], sizes = [16, 16], strides = [1, 1]} : vector<16x32xf32> to vector<16x16xf32>
    %26 = vector.extract_strided_slice %24 {offsets = [0, 16], sizes = [16, 16], strides = [1, 1]} : vector<16x32xf32> to vector<16x16xf32>
    %cst_22 = arith.constant 5.000000e-01 : f32
    %27 = vector.broadcast %cst_22 : f32 to vector<16x16xf32>
    %28 = arith.mulf %27, %26 : vector<16x16xf32>
    %29 = math.exp %28 : vector<16x16xf32>
    %30 = arith.mulf %2, %29 : vector<16x16xf32>
    %31 = arith.addf %25, %30 : vector<16x16xf32>
    %c0_23 = arith.constant 0 : index
    %c0_24 = arith.constant 0 : index
    %32 = vector.load %arg11[%c0_23, %c0_24] : memref<16x128xf32, #tpu.memory_space<vmem>>, vector<16x128xf32>
    %cst_25 = arith.constant dense<0.000000e+00> : vector<16x128xf32>
    %33 = tpu.matmul %31, %32, %cst_25 {dimension_numbers = #tpu.dot_dimension_numbers<[1], [0], [0], [1], [0, 0, 1, 1], [], []>} : vector<16x16xf32>, vector<16x128xf32>, vector<16x128xf32> -> vector<16x128xf32>
    %34 = arith.addf %33, %6 : vector<16x128xf32>
    %c0_26 = arith.constant 0 : index
    %c0_27 = arith.constant 0 : index
    %35 = vector.load %arg12[%c0_26, %c0_27] : memref<1x128xf32, #tpu.memory_space<vmem>>, vector<1x128xf32>
    %36 = vector.broadcast %35 : vector<1x128xf32> to vector<16x128xf32>
    %37 = arith.addf %34, %36 : vector<16x128xf32>
    %38 = math.tanh %37 : vector<16x128xf32>
    %c0_28 = arith.constant 0 : index
    %c0_29 = arith.constant 0 : index
    %39 = vector.load %arg13[%c0_28, %c0_29] : memref<128x128xf32, #tpu.memory_space<vmem>>, vector<128x128xf32>
    %cst_30 = arith.constant dense<0.000000e+00> : vector<16x128xf32>
    %40 = tpu.matmul %38, %39, %cst_30 {dimension_numbers = #tpu.dot_dimension_numbers<[1], [0], [0], [1], [0, 0, 1, 1], [], []>} : vector<16x128xf32>, vector<128x128xf32>, vector<16x128xf32> -> vector<16x128xf32>
    %c0_31 = arith.constant 0 : index
    %c0_32 = arith.constant 0 : index
    %41 = vector.load %arg14[%c0_31, %c0_32] : memref<1x128xf32, #tpu.memory_space<vmem>>, vector<1x128xf32>
    %42 = vector.broadcast %41 : vector<1x128xf32> to vector<16x128xf32>
    %43 = arith.addf %40, %42 : vector<16x128xf32>
    %44 = math.tanh %43 : vector<16x128xf32>
    %c0_33 = arith.constant 0 : index
    %c0_34 = arith.constant 0 : index
    %45 = vector.load %arg15[%c0_33, %c0_34] : memref<128x256xf32, #tpu.memory_space<vmem>>, vector<128x256xf32>
    %cst_35 = arith.constant dense<0.000000e+00> : vector<16x256xf32>
    %46 = tpu.matmul %44, %45, %cst_35 {dimension_numbers = #tpu.dot_dimension_numbers<[1], [0], [0], [1], [0, 0, 1, 1], [], []>} : vector<16x128xf32>, vector<128x256xf32>, vector<16x256xf32> -> vector<16x256xf32>
    %c0_36 = arith.constant 0 : index
    %c0_37 = arith.constant 0 : index
    %47 = vector.load %arg16[%c0_36, %c0_37] : memref<1x256xf32, #tpu.memory_space<vmem>>, vector<1x256xf32>
    %48 = vector.broadcast %47 : vector<1x256xf32> to vector<16x256xf32>
    %49 = arith.addf %46, %48 : vector<16x256xf32>
    %50 = arith.negf %49 : vector<16x256xf32>
    %51 = math.exp %50 : vector<16x256xf32>
    %cst_38 = arith.constant 1.000000e+00 : f32
    %52 = vector.broadcast %cst_38 : f32 to vector<16x256xf32>
    %53 = arith.addf %52, %51 : vector<16x256xf32>
    %54 = arith.divf %52, %53 : vector<16x256xf32>
    %c0_39 = arith.constant 0 : index
    %c0_40 = arith.constant 0 : index
    %55 = vector.load %arg17[%c0_39, %c0_40] : memref<16x256xf32, #tpu.memory_space<vmem>>, vector<16x256xf32>
    tpu.vector_store %arg17[%c0_39, %c0_40], %54 {strides = array<i32>} : memref<16x256xf32, #tpu.memory_space<vmem>>, vector<16x256xf32>,
    %c0_41 = arith.constant 0 : index
    %c0_42 = arith.constant 0 : index
    %56 = vector.load %arg18[%c0_41, %c0_42] : memref<16x32xf32, #tpu.memory_space<vmem>>, vector<16x32xf32>
    tpu.vector_store %arg18[%c0_41, %c0_42], %24 {strides = array<i32>} : memref<16x32xf32, #tpu.memory_space<vmem>>, vector<16x32xf32>,
    return
  }
  func.func @transform_0(%arg0: i32) -> (i32, i32) {
    %c0_i32 = arith.constant 0 : i32
    %c0_i32_0 = arith.constant 0 : i32
    return %arg0, %c0_i32 : i32, i32
  }
  func.func @transform_1(%arg0: i32) -> (i32, i32) {
    %c0_i32 = arith.constant 0 : i32
    %c0_i32_0 = arith.constant 0 : i32
    return %arg0, %c0_i32 : i32, i32
  }
  func.func @transform_2(%arg0: i32) -> (i32, i32) {
    %c0_i32 = arith.constant 0 : i32
    %c0_i32_0 = arith.constant 0 : i32
    return %arg0, %c0_i32 : i32, i32
  }
  func.func @transform_3(%arg0: i32) -> (i32, i32) {
    %c0_i32 = arith.constant 0 : i32
    %c0_i32_0 = arith.constant 0 : i32
    %c0_i32_1 = arith.constant 0 : i32
    return %c0_i32, %c0_i32_0 : i32, i32
  }
  func.func @transform_4(%arg0: i32) -> (i32, i32) {
    %c0_i32 = arith.constant 0 : i32
    %c0_i32_0 = arith.constant 0 : i32
    %c0_i32_1 = arith.constant 0 : i32
    return %c0_i32, %c0_i32_0 : i32, i32
  }
  func.func @transform_5(%arg0: i32) -> (i32, i32) {
    %c0_i32 = arith.constant 0 : i32
    %c0_i32_0 = arith.constant 0 : i32
    %c0_i32_1 = arith.constant 0 : i32
    return %c0_i32, %c0_i32_0 : i32, i32
  }
  func.func @transform_6(%arg0: i32) -> (i32, i32) {
    %c0_i32 = arith.constant 0 : i32
    %c0_i32_0 = arith.constant 0 : i32
    %c0_i32_1 = arith.constant 0 : i32
    return %c0_i32, %c0_i32_0 : i32, i32
  }
  func.func @transform_7(%arg0: i32) -> (i32, i32) {
    %c0_i32 = arith.constant 0 : i32
    %c0_i32_0 = arith.constant 0 : i32
    %c0_i32_1 = arith.constant 0 : i32
    return %c0_i32, %c0_i32_0 : i32, i32
  }
  func.func @transform_8(%arg0: i32) -> (i32, i32) {
    %c0_i32 = arith.constant 0 : i32
    %c0_i32_0 = arith.constant 0 : i32
    %c0_i32_1 = arith.constant 0 : i32
    return %c0_i32, %c0_i32_0 : i32, i32
  }
  func.func @transform_9(%arg0: i32) -> (i32, i32) {
    %c0_i32 = arith.constant 0 : i32
    %c0_i32_0 = arith.constant 0 : i32
    %c0_i32_1 = arith.constant 0 : i32
    return %c0_i32, %c0_i32_0 : i32, i32
  }
  func.func @transform_10(%arg0: i32) -> (i32, i32) {
    %c0_i32 = arith.constant 0 : i32
    %c0_i32_0 = arith.constant 0 : i32
    %c0_i32_1 = arith.constant 0 : i32
    return %c0_i32, %c0_i32_0 : i32, i32
  }
  func.func @transform_11(%arg0: i32) -> (i32, i32) {
    %c0_i32 = arith.constant 0 : i32
    %c0_i32_0 = arith.constant 0 : i32
    %c0_i32_1 = arith.constant 0 : i32
    return %c0_i32, %c0_i32_0 : i32, i32
  }
  func.func @transform_12(%arg0: i32) -> (i32, i32) {
    %c0_i32 = arith.constant 0 : i32
    %c0_i32_0 = arith.constant 0 : i32
    %c0_i32_1 = arith.constant 0 : i32
    return %c0_i32, %c0_i32_0 : i32, i32
  }
  func.func @transform_13(%arg0: i32) -> (i32, i32) {
    %c0_i32 = arith.constant 0 : i32
    %c0_i32_0 = arith.constant 0 : i32
    %c0_i32_1 = arith.constant 0 : i32
    return %c0_i32, %c0_i32_0 : i32, i32
  }
  func.func @transform_14(%arg0: i32) -> (i32, i32) {
    %c0_i32 = arith.constant 0 : i32
    %c0_i32_0 = arith.constant 0 : i32
    %c0_i32_1 = arith.constant 0 : i32
    return %c0_i32, %c0_i32_0 : i32, i32
  }
  func.func @transform_15(%arg0: i32) -> (i32, i32) {
    %c0_i32 = arith.constant 0 : i32
    %c0_i32_0 = arith.constant 0 : i32
    %c0_i32_1 = arith.constant 0 : i32
    return %c0_i32, %c0_i32_0 : i32, i32
  }
  func.func @transform_16(%arg0: i32) -> (i32, i32) {
    %c0_i32 = arith.constant 0 : i32
    %c0_i32_0 = arith.constant 0 : i32
    return %arg0, %c0_i32 : i32, i32
  }
  func.func @transform_17(%arg0: i32) -> (i32, i32) {
    %c0_i32 = arith.constant 0 : i32
    %c0_i32_0 = arith.constant 0 : i32
    return %arg0, %c0_i32 : i32, i32
  }
}

</mosaic_0001>

<bundles_post_ra>
// kernel: cvae_forward.1
= control target key start
LH: loop header
LB: loop body
LE: loop exit
PB: predicated region body
PF: predicated region fallthrough
CT: control target
= control target key end

     0   :  { %s2060_s0 = inlined_call_operand.vmem [shape: f32[16,4], index: 0, kind: input, shape index: {}]   ;;  %s2061_s1 = inlined_call_operand.vmem [shape: f32[16,256], index: 1, kind: input, shape index: {}]   ;;  %s2062_s2 = inlined_call_operand.vmem [shape: f32[16,16], index: 2, kind: input, shape index: {}]   ;;  %s2063_s3 = inlined_call_operand.vmem [shape: f32[256,256], index: 3, kind: input, shape index: {}]   ;;  %s2064_s4 = inlined_call_operand.vmem [shape: f32[4,384], index: 4, kind: input, shape index: {}]   ;;  %s2065_s5 = inlined_call_operand.vmem [shape: f32[1,256], index: 5, kind: input, shape index: {}]   ;;  %s2066_s6 = inlined_call_operand.vmem [shape: f32[256,256], index: 6, kind: input, shape index: {}]   ;;  %s2067_s7 = inlined_call_operand.vmem [shape: f32[1,256], index: 7, kind: input, shape index: {}]   ;;  %s2068_s8 = inlined_call_operand.vmem [shape: f32[256,32], index: 8, kind: input, shape index: {}]   ;;  %s2069_s9 = inlined_call_operand.vmem [shape: f32[1,32], index: 9, kind: input, shape index: {}]   ;;  %s2070_s10 = inlined_call_operand.vmem [shape: f32[16,128], index: 10, kind: input, shape index: {}]   ;;  %s2071_s11 = inlined_call_operand.vmem [shape: f32[1,128], index: 11, kind: input, shape index: {}]   ;;  %s2072_s12 = inlined_call_operand.vmem [shape: f32[128,128], index: 12, kind: input, shape index: {}]   ;;  %s2073_s13 = inlined_call_operand.vmem [shape: f32[1,128], index: 13, kind: input, shape index: {}]   ;;  %s2074_s14 = inlined_call_operand.vmem [shape: f32[128,256], index: 14, kind: input, shape index: {}]   ;;  %s2075_s15 = inlined_call_operand.vmem [shape: f32[1,256], index: 15, kind: input, shape index: {}]   ;;  %s2076_s16 = inlined_call_operand.hbm [shape: f32[16,256], index: 16, kind: output, shape index: {0}]   ;;  %s2077_s17 = inlined_call_operand.vmem [shape: f32[16,32], index: 17, kind: output, shape index: {1}]  }
   0x1   :  { %2080 = sst [smem:[#allocation5_spill]] %s2060_s0 }
   0x2   :  { %2081 = sst [smem:[#allocation6_spill]] %s2061_s1 }
   0x3   :  { %v266_v0 = vld [vmem:[%s2063_s3 + $0xf8] sm:$0xff]  ;;  %v265_v1 = vld [vmem:[%s2063_s3 + $0xf0] sm:$0xff]  ;;  %v264_v2 = vld [vmem:[%s2063_s3 + $0xe8] sm:$0xff]  ;;  %v1250_v4 = vmov 0.0   ;;  %vm76_vm0 = vcmask 1043456   ;;  %s2082_s19 = sld [smem:[#allocation5_spill]] }
   0x4   :  { %299 = vmatprep.subr.mxu0 %v266_v0  ;;  %v263_v3 = vld [vmem:[%s2063_s3 + $0xe0] sm:$0xff]  ;;  %147 = vmatprep.mubr.f32.mxu1 %v1250_v4  ;;  %v262_v5 = vld [vmem:[%s2063_s3 + $0xd8] sm:$0xff]  ;;  %v261_v6 = vld [vmem:[%s2063_s3 + $0xd0] sm:$0xff]  ;;  %vm69_vm1 = vcmask 31744   ;;  %s2083_s23 = sld [smem:[#allocation6_spill]] }
   0x5   :  { %300 = vmatpush1.msra.mxu0 %v265_v1  ;;  %v260_v7 = vld [vmem:[%s2063_s3 + $0xc8] sm:$0xff]  ;;  %v259_v8 = vld [vmem:[%s2063_s3 + $0xc0] sm:$0xff]  ;;  %v258_v9 = vld [vmem:[%s2063_s3 + $0xb8] sm:$0xff] }
   0x6   :  { %301 = vmatprep.subr.mxu0 %v264_v2  ;;  %v257_v10 = vld [vmem:[%s2063_s3 + $0xb0] sm:$0xff]  ;;  %v256_v11 = vld [vmem:[%s2063_s3 + $0xa8] sm:$0xff]  ;;  %v255_v12 = vld [vmem:[%s2063_s3 + $0xa0] sm:$0xff] }
   0x7   :  { %302 = vmatpush1.msra.mxu0 %v263_v3  ;;  %v254_v13 = vld [vmem:[%s2063_s3 + $0x98] sm:$0xff]  ;;  %v253_v14 = vld [vmem:[%s2063_s3 + $0x90] sm:$0xff]  ;;  %v252_v15 = vld [vmem:[%s2063_s3 + $0x88] sm:$0xff] }
   0x8   :  { %303 = vmatprep.subr.mxu0 %v262_v5  ;;  %v251_v16 = vld [vmem:[%s2063_s3 + $0x80] sm:$0xff]  ;;  %v250_v17 = vld [vmem:[%s2063_s3 + $0x78] sm:$0xff]  ;;  %v249_v18 = vld [vmem:[%s2063_s3 + $0x70] sm:$0xff] }
   0x9   :  { %304 = vmatpush1.msra.mxu0 %v261_v6  ;;  %v248_v19 = vld [vmem:[%s2063_s3 + $0x68] sm:$0xff]  ;;  %v247_v20 = vld [vmem:[%s2063_s3 + $0x60] sm:$0xff]  ;;  %v246_v21 = vld [vmem:[%s2063_s3 + $0x58] sm:$0xff] }
   0xa   :  { %305 = vmatprep.subr.mxu0 %v260_v7  ;;  %v245_v22 = vld [vmem:[%s2063_s3 + $0x50] sm:$0xff]  ;;  %v244_v23 = vld [vmem:[%s2063_s3 + $0x48] sm:$0xff]  ;;  %v64_v24 = vld [vmem:[%s2064_s4] sm:$0xff] }
   0xb   :  { %306 = vmatpush1.msra.mxu0 %v259_v8  ;;  %v243_v25 = vld [vmem:[%s2063_s3 + $0x40] sm:$0xff]  ;;  %v68_v26 = vcombine.high %v64_v24, %v64_v24  ;;  %v242_v27 = vld [vmem:[%s2063_s3 + $0x38] sm:$0xff]  ;;  %v241_v29 = vld [vmem:[%s2063_s3 + $0x30] sm:$0xff] }
   0xc   :  { %307 = vmatprep.subr.mxu0 %v258_v9  ;;  %v56_v28 = vld [vmem:[%s2082_s19] sm:$0xff]  ;;  %v59_v30 = vld [vmem:[%s2083_s23 + $0x8] sm:$0xff]  ;;  %v238_v34 = vld [vmem:[%s2063_s3 + $0x18] sm:$0xff] }
   0xd   :  { %308 = vmatpush1.msra.mxu0 %v257_v10  ;;  %1052 = vmatprep.subr.msk.mxu1 %vm76_vm0, %v68_v26  ;;  %v240_v31 = vld [vmem:[%s2063_s3 + $0x28] sm:$0xff]  ;;  %v239_v32 = vld [vmem:[%s2063_s3 + $0x20] sm:$0xff]  ;;  %v237_v36 = vld [vmem:[%s2063_s3 + $0x10] sm:$0xff] }
   0xe   :  { %309 = vmatprep.subr.mxu0 %v256_v11  ;;  %1053 = vmatpush1.msk.msra.mxu1 %vm76_vm0, %v64_v24  ;;  %v65_v33 = vld [vmem:[%s2064_s4 + $0x8] sm:$0xf]  ;;  %v235_v38 = vld [vmem:[%s2063_s3] sm:$0xff]  ;;  %v427_v39 = vld [vmem:[%s2066_s6 + $0xf8] sm:$0xff] }
   0xf   :  { %310 = vmatpush1.msra.mxu0 %v255_v12  ;;  %1054 = vmatmul.mubr.msk.f32.vlgmr.msra.gmra.mxu1 %vm69_vm1, %v56_v28  ;;  %v57_v35 = vld [vmem:[%s2082_s19 + $0x8] sm:$0xff]  ;;  %v298_v40 = vld [vmem:[%s2063_s3 + $0x1f8] sm:$0xff]  ;;  %v297_v41 = vld [vmem:[%s2063_s3 + $0x1f0] sm:$0xff] }
  0x10   :  { %311 = vmatprep.subr.mxu0 %v254_v13  ;;  %363 = vmatprep.mubr.f32.mxu0 %v59_v30  ;;  %v236_v37 = vld [vmem:[%s2063_s3 + $0x8] sm:$0xff]  ;;  %v426_v42 = vld [vmem:[%s2066_s6 + $0xf0] sm:$0xff]  ;;  %v295_v45 = vld [vmem:[%s2063_s3 + $0x1e0] sm:$0xff] }
  0x11   :  { %312 = vmatpush1.msra.mxu0 %v253_v14  ;;  %153 = vmatprep.mubr.f32.mxu1 %v1250_v4  ;;  %v296_v43 = vld [vmem:[%s2063_s3 + $0x1e8] sm:$0xff]  ;;  %v424_v46 = vld [vmem:[%s2066_s6 + $0xe0] sm:$0xff]  ;;  %v294_v47 = vld [vmem:[%s2063_s3 + $0x1d8] sm:$0xff] }
  0x12   :  { %313 = vmatprep.subr.mxu0 %v252_v15  ;;  %1131 = vmatprep.subr.msk.mxu1 %vm76_vm0, %v65_v33  ;;  %v425_v44 = vld [vmem:[%s2066_s6 + $0xe8] sm:$0xff]  ;;  %v423_v48 = vld [vmem:[%s2066_s6 + $0xd8] sm:$0xff]  ;;  %v293_v49 = vld [vmem:[%s2063_s3 + $0x1d0] sm:$0xff] }
  0x13   :  { %314 = vmatpush1.msra.mxu0 %v251_v16  ;;  %1055 = vmatmul.mubr.msk.f32.gmra.mxu1 %vm69_vm1, %v57_v35  ;;  %v422_v50 = vld [vmem:[%s2066_s6 + $0xd0] sm:$0xff]  ;;  %v292_v51 = vld [vmem:[%s2063_s3 + $0x1c8] sm:$0xff]  ;;  %v291_v53 = vld [vmem:[%s2063_s3 + $0x1c0] sm:$0xff] }
  0x14   :  { %315 = vmatprep.subr.mxu0 %v250_v17  ;;  %1132 = vmatpush3.msk.msra.mxu1 %vm76_vm0, %v65_v33  ;;  %v421_v52 = vld [vmem:[%s2066_s6 + $0xc8] sm:$0xff]  ;;  %v420_v54 = vld [vmem:[%s2066_s6 + $0xc0] sm:$0xff] }
  0x15   :  { %316 = vmatpush1.msra.mxu0 %v249_v18  ;;  %1133 = vmatprep.mubr.msk.f32.mxu1 %vm69_vm1, %v56_v28 }
  0x16   :  { %317 = vmatprep.subr.mxu0 %v248_v19  ;;  %472 = vmatprep.subr.mxu1 %v427_v39 }
  0x17   :  { %318 = vmatpush1.msra.mxu0 %v247_v20  ;;  %1134 = vmatmul.mubr.msk.f32.vlgmr.msra.gmra.mxu1 %vm69_vm1, %v57_v35 }
  0x18   :  { %319 = vmatprep.subr.mxu0 %v246_v21  ;;  %473 = vmatpush1.msra.mxu1 %v426_v42 }
  0x19   :  { %320 = vmatpush1.msra.mxu0 %v245_v22  ;;  %474 = vmatprep.subr.mxu1 %v425_v44 }
  0x1a   :  { %321 = vmatprep.subr.mxu0 %v244_v23  ;;  %475 = vmatpush1.msra.mxu1 %v424_v46 }
  0x1b   :  { %322 = vmatpush1.msra.mxu0 %v243_v25  ;;  %476 = vmatprep.subr.mxu1 %v423_v48 }
  0x1c   :  { %323 = vmatprep.subr.mxu0 %v242_v27 }
  0x1d   :  { %324 = vmatpush1.msra.mxu0 %v241_v29 }
  0x1e   :  { %325 = vmatprep.subr.mxu0 %v240_v31 }
  0x1f   :  { %326 = vmatpush1.msra.mxu0 %v239_v32 }
  0x20   :  { %327 = vmatprep.subr.mxu0 %v238_v34 }
  0x21   :  { %328 = vmatpush1.msra.mxu0 %v237_v36 }
  0x22   :  { %329 = vmatprep.subr.mxu0 %v236_v37 }
  0x23   :  { %330 = vmatpush1.msra.mxu0 %v235_v38 }
  0x24   :  { %331 = vmatprep.subr.mxu0 %v298_v40 }
  0x25   :  { %332 = vmatpush2.msra.mxu0 %v297_v41 }
  0x26   :  { %333 = vmatprep.subr.mxu0 %v296_v43 }
  0x27   :  { %334 = vmatpush2.msra.mxu0 %v295_v45 }
  0x28   :  { %335 = vmatprep.subr.mxu0 %v294_v47 }
  0x29   :  { %23 = vsyncpa [#allocation3], 0  ;;  %336 = vmatpush2.msra.mxu0 %v293_v49  ;;  %v290_v55 = vld [vmem:[%s2063_s3 + $0x1b8] sm:$0xff]  ;;  %477 = vmatpush1.msra.mxu1 %v422_v50  ;;  %v289_v57 = vld [vmem:[%s2063_s3 + $0x1b0] sm:$0xff]  ;;  %vm1029_vm2 = vcmask 261120   ;;  %s1251_s24 = smov 112  }
  0x2a   :  { %v419_v56 = vld [vmem:[%s2066_s6 + $0xb8] sm:$0xff]  ;;  %337 = vmatprep.subr.mxu0 %v292_v51  ;;  %478 = vmatprep.subr.mxu1 %v421_v52  ;;  %v418_v58 = vld [vmem:[%s2066_s6 + $0xb0] sm:$0xff]  ;;  %v288_v59 = vld [vmem:[%s2063_s3 + $0x1a8] sm:$0xff]  ;;  %vm687_vm3 = vcmask 130048  }
  0x2b   :  { %338 = vmatpush2.msra.mxu0 %v291_v53  ;;  %479 = vmatpush1.msra.mxu1 %v420_v54  ;;  %v417_v60 = vld [vmem:[%s2066_s6 + $0xa8] sm:$0xff]  ;;  %v287_v61 = vld [vmem:[%s2063_s3 + $0x1a0] sm:$0xff]  ;;  %v286_v63 = vld [vmem:[%s2063_s3 + $0x198] sm:$0xff] }
  0x2c   :  { %339 = vmatprep.subr.mxu0 %v290_v55  ;;  %480 = vmatprep.subr.mxu1 %v419_v56  ;;  %v416_v62 = vld [vmem:[%s2066_s6 + $0xa0] sm:$0xff]  ;;  %v415_v0 = vld [vmem:[%s2066_s6 + $0x98] sm:$0xff]  ;;  %v285_v1 = vld [vmem:[%s2063_s3 + $0x190] sm:$0xff] }
  0x2d   :  { %340 = vmatpush2.msra.mxu0 %v289_v57  ;;  %481 = vmatpush1.msra.mxu1 %v418_v58  ;;  %v414_v2 = vld [vmem:[%s2066_s6 + $0x90] sm:$0xff]  ;;  %v284_v3 = vld [vmem:[%s2063_s3 + $0x188] sm:$0xff]  ;;  %v283_v6 = vld [vmem:[%s2063_s3 + $0x180] sm:$0xff] }
  0x2e   :  { %341 = vmatprep.subr.mxu0 %v288_v59  ;;  %482 = vmatprep.subr.mxu1 %v417_v60  ;;  %v413_v5 = vld [vmem:[%s2066_s6 + $0x88] sm:$0xff]  ;;  %v412_v7 = vld [vmem:[%s2066_s6 + $0x80] sm:$0xff]  ;;  %v282_v8 = vld [vmem:[%s2063_s3 + $0x178] sm:$0xff] }
  0x2f   :  { %342 = vmatpush2.msra.mxu0 %v287_v61  ;;  %483 = vmatpush1.msra.mxu1 %v416_v62  ;;  %v411_v9 = vld [vmem:[%s2066_s6 + $0x78] sm:$0xff]  ;;  %v281_v10 = vld [vmem:[%s2063_s3 + $0x170] sm:$0xff]  ;;  %v280_v12 = vld [vmem:[%s2063_s3 + $0x168] sm:$0xff] }
  0x30   :  { %343 = vmatprep.subr.mxu0 %v286_v63  ;;  %484 = vmatprep.subr.mxu1 %v415_v0  ;;  %v410_v11 = vld [vmem:[%s2066_s6 + $0x70] sm:$0xff]  ;;  %v409_v13 = vld [vmem:[%s2066_s6 + $0x68] sm:$0xff]  ;;  %v279_v14 = vld [vmem:[%s2063_s3 + $0x160] sm:$0xff] }
  0x31   :  { %344 = vmatpush2.msra.mxu0 %v285_v1  ;;  %485 = vmatpush1.msra.mxu1 %v414_v2  ;;  %v408_v15 = vld [vmem:[%s2066_s6 + $0x60] sm:$0xff]  ;;  %v278_v16 = vld [vmem:[%s2063_s3 + $0x158] sm:$0xff]  ;;  %v277_v18 = vld [vmem:[%s2063_s3 + $0x150] sm:$0xff] }
  0x32   :  { %345 = vmatprep.subr.mxu0 %v284_v3  ;;  %486 = vmatprep.subr.mxu1 %v413_v5  ;;  %v407_v17 = vld [vmem:[%s2066_s6 + $0x58] sm:$0xff]  ;;  %v406_v19 = vld [vmem:[%s2066_s6 + $0x50] sm:$0xff]  ;;  %v276_v20 = vld [vmem:[%s2063_s3 + $0x148] sm:$0xff] }
  0x33   :  { %346 = vmatpush2.msra.mxu0 %v283_v6  ;;  %487 = vmatpush1.msra.mxu1 %v412_v7  ;;  %v405_v21 = vld [vmem:[%s2066_s6 + $0x48] sm:$0xff]  ;;  %v275_v22 = vld [vmem:[%s2063_s3 + $0x140] sm:$0xff]  ;;  %v274_v24 = vld [vmem:[%s2063_s3 + $0x138] sm:$0xff] }
  0x34   :  { %347 = vmatprep.subr.mxu0 %v282_v8  ;;  %488 = vmatprep.subr.mxu1 %v411_v9  ;;  %v404_v23 = vld [vmem:[%s2066_s6 + $0x40] sm:$0xff]  ;;  %v403_v25 = vld [vmem:[%s2066_s6 + $0x38] sm:$0xff]  ;;  %v273_v26 = vld [vmem:[%s2063_s3 + $0x130] sm:$0xff] }
  0x35   :  { %348 = vmatpush2.msra.mxu0 %v281_v10  ;;  %489 = vmatpush1.msra.mxu1 %v410_v11  ;;  %v402_v27 = vld [vmem:[%s2066_s6 + $0x30] sm:$0xff]  ;;  %v272_v28 = vld [vmem:[%s2063_s3 + $0x128] sm:$0xff]  ;;  %v271_v30 = vld [vmem:[%s2063_s3 + $0x120] sm:$0xff] }
  0x36   :  { %349 = vmatprep.subr.mxu0 %v280_v12  ;;  %490 = vmatprep.subr.mxu1 %v409_v13  ;;  %v401_v29 = vld [vmem:[%s2066_s6 + $0x28] sm:$0xff]  ;;  %v400_v31 = vld [vmem:[%s2066_s6 + $0x20] sm:$0xff]  ;;  %v270_v32 = vld [vmem:[%s2063_s3 + $0x118] sm:$0xff] }
  0x37   :  { %350 = vmatpush2.msra.mxu0 %v279_v14  ;;  %491 = vmatpush1.msra.mxu1 %v408_v15  ;;  %v399_v33 = vld [vmem:[%s2066_s6 + $0x18] sm:$0xff]  ;;  %v269_v34 = vld [vmem:[%s2063_s3 + $0x110] sm:$0xff]  ;;  %v268_v36 = vld [vmem:[%s2063_s3 + $0x108] sm:$0xff] }
  0x38   :  { %351 = vmatprep.subr.mxu0 %v278_v16  ;;  %492 = vmatprep.subr.mxu1 %v407_v17  ;;  %v398_v35 = vld [vmem:[%s2066_s6 + $0x10] sm:$0xff]  ;;  %v397_v37 = vld [vmem:[%s2066_s6 + $0x8] sm:$0xff]  ;;  %v267_v38 = vld [vmem:[%s2063_s3 + $0x100] sm:$0xff] }
  0x39   :  { %352 = vmatpush2.msra.mxu0 %v277_v18  ;;  %493 = vmatpush1.msra.mxu1 %v406_v19  ;;  %v396_v39 = vld [vmem:[%s2066_s6] sm:$0xff]  ;;  %v459_v41 = vld [vmem:[%s2066_s6 + $0x1f8] sm:$0xff]  ;;  %v458_v43 = vld [vmem:[%s2066_s6 + $0x1f0] sm:$0xff] }
  0x3a   :  { %353 = vmatprep.subr.mxu0 %v276_v20  ;;  %494 = vmatprep.subr.mxu1 %v405_v21  ;;  %v58_v40 = vld [vmem:[%s2083_s23] sm:$0xff]  ;;  %v61_v42 = vld [vmem:[%s2083_s23 + $0x18] sm:$0xff]  ;;  %v457_v44 = vld [vmem:[%s2066_s6 + $0x1e8] sm:$0xff] }
  0x3b   :  { %354 = vmatpush2.msra.mxu0 %v275_v22  ;;  %495 = vmatpush1.msra.mxu1 %v404_v23  ;;  %v456_v45 = vld [vmem:[%s2066_s6 + $0x1e0] sm:$0xff]  ;;  %v60_v46 = vld [vmem:[%s2083_s23 + $0x10] sm:$0xff]  ;;  %v455_v47 = vld [vmem:[%s2066_s6 + $0x1d8] sm:$0xff] }
  0x3c   :  { %355 = vmatprep.subr.mxu0 %v274_v24  ;;  %496 = vmatprep.subr.mxu1 %v403_v25  ;;  %v454_v48 = vld [vmem:[%s2066_s6 + $0x1d0] sm:$0xff]  ;;  %v453_v49 = vld [vmem:[%s2066_s6 + $0x1c8] sm:$0xff]  ;;  %v452_v50 = vld [vmem:[%s2066_s6 + $0x1c0] sm:$0xff]  ;;  %v378_v24 = vlaneseq }
  0x3d   :  { %356 = vmatpush2.msra.mxu0 %v273_v26  ;;  %497 = vmatpush1.msra.mxu1 %v402_v27  ;;  %v451_v51 = vld [vmem:[%s2066_s6 + $0x1b8] sm:$0xff]  ;;  %v450_v52 = vld [vmem:[%s2066_s6 + $0x1b0] sm:$0xff]  ;;  %v449_v53 = vld [vmem:[%s2066_s6 + $0x1a8] sm:$0xff] }
  0x3e   :  { %357 = vmatprep.subr.mxu0 %v272_v28  ;;  %498 = vmatprep.subr.mxu1 %v401_v29  ;;  %v448_v54 = vld [vmem:[%s2066_s6 + $0x1a0] sm:$0xff]  ;;  %v447_v55 = vld [vmem:[%s2066_s6 + $0x198] sm:$0xff]  ;;  %v446_v56 = vld [vmem:[%s2066_s6 + $0x190] sm:$0xff]  ;;  %v379_v25 = vshrl.u32 %v378_v24, 7 }
  0x3f   :  { %358 = vmatpush2.msra.mxu0 %v271_v30  ;;  %499 = vmatpush1.msra.mxu1 %v400_v31  ;;  %v445_v57 = vld [vmem:[%s2066_s6 + $0x188] sm:$0xff]  ;;  %v444_v58 = vld [vmem:[%s2066_s6 + $0x180] sm:$0xff]  ;;  %v443_v59 = vld [vmem:[%s2066_s6 + $0x178] sm:$0xff] }
  0x40   :  { %359 = vmatprep.subr.mxu0 %v270_v32  ;;  %500 = vmatprep.subr.mxu1 %v399_v33  ;;  %v442_v60 = vld [vmem:[%s2066_s6 + $0x170] sm:$0xff]  ;;  %v441_v61 = vld [vmem:[%s2066_s6 + $0x168] sm:$0xff]  ;;  %v440_v62 = vld [vmem:[%s2066_s6 + $0x160] sm:$0xff]  ;;  %v1799_v27 = vsub.s32 0, %v379_v25  ;;  %v1804_v29 = vsub.s32 1, %v379_v25 }
  0x41   :  { %360 = vmatpush2.msra.mxu0 %v269_v34  ;;  %501 = vmatpush1.msra.mxu1 %v398_v35  ;;  %v439_v63 = vld [vmem:[%s2066_s6 + $0x158] sm:$0xff]  ;;  %v438_v0 = vld [vmem:[%s2066_s6 + $0x150] sm:$0xff]  ;;  %v437_v1 = vld [vmem:[%s2066_s6 + $0x148] sm:$0xff] }
  0x42   :  { %361 = vmatprep.subr.mxu0 %v268_v36  ;;  %502 = vmatprep.subr.mxu1 %v397_v37  ;;  %v436_v2 = vld [vmem:[%s2066_s6 + $0x140] sm:$0xff]  ;;  %v435_v3 = vld [vmem:[%s2066_s6 + $0x138] sm:$0xff]  ;;  %v434_v5 = vld [vmem:[%s2066_s6 + $0x130] sm:$0xff] }
  0x43   :  { %362 = vmatpush2.msra.mxu0 %v267_v38  ;;  %503 = vmatpush1.msra.mxu1 %v396_v39  ;;  %v433_v6 = vld [vmem:[%s2066_s6 + $0x128] sm:$0xff]  ;;  %v432_v7 = vld [vmem:[%s2066_s6 + $0x120] sm:$0xff]  ;;  %v431_v8 = vld [vmem:[%s2066_s6 + $0x118] sm:$0xff] }
  0x44   :  { %364 = vmatmul.mubr.f32.vlgmr.msra.gmra.mxu0 %v58_v40  ;;  %504 = vmatprep.subr.mxu1 %v459_v41  ;;  %v430_v9 = vld [vmem:[%s2066_s6 + $0x110] sm:$0xff]  ;;  %v429_v10 = vld [vmem:[%s2066_s6 + $0x108] sm:$0xff]  ;;  %v428_v11 = vld [vmem:[%s2066_s6 + $0x100] sm:$0xff] }
  0x45   :  { %369 = vmatprep.mubr.f32.mxu0 %v61_v42  ;;  %505 = vmatpush2.msra.mxu1 %v458_v43  ;;  %v584_v12 = vld [vmem:[%s2068_s8 + $0xf8] sm:$0xff]  ;;  %v583_v14 = vld [vmem:[%s2068_s8 + $0xf0] sm:$0xff]  ;;  %v582_v16 = vld [vmem:[%s2068_s8 + $0xe8] sm:$0xff] }
  0x46   :  { %506 = vmatprep.subr.mxu1 %v457_v44  ;;  %v568_v13 = vld [vmem:[%s2068_s8 + $0x78] sm:$0xff]  ;;  %1071 = vmatprep.subr.mxu0 %v584_v12  ;;  %v567_v15 = vld [vmem:[%s2068_s8 + $0x70] sm:$0xff]  ;;  %v566_v17 = vld [vmem:[%s2068_s8 + $0x68] sm:$0xff] }
  0x47   :  { %507 = vmatpush2.msra.mxu1 %v456_v45  ;;  %1072 = vmatpush3.msra.mxu0 %v568_v13  ;;  %v581_v18 = vld [vmem:[%s2068_s8 + $0xe0] sm:$0xff]  ;;  %v580_v20 = vld [vmem:[%s2068_s8 + $0xd8] sm:$0xff]  ;;  %v579_v22 = vld [vmem:[%s2068_s8 + $0xd0] sm:$0xff] }
  0x48   :  { %370 = vmatmul.mubr.f32.gmra.mxu0 %v60_v46  ;;  %508 = vmatprep.subr.mxu1 %v455_v47  ;;  %v565_v19 = vld [vmem:[%s2068_s8 + $0x60] sm:$0xff]  ;;  %v564_v21 = vld [vmem:[%s2068_s8 + $0x58] sm:$0xff]  ;;  %v563_v23 = vld [vmem:[%s2068_s8 + $0x50] sm:$0xff] }
  0x49   :  { %509 = vmatpush2.msra.mxu1 %v454_v48  ;;  %1073 = vmatprep.subr.mxu0 %v583_v14  ;;  %v376_v28 = vld [vmem:[%s2065_s5] sm:$0x3]  ;;  %v686_v25 = vld [vmem:[%s2070_s10 + $0x8] sm:$0xff] }
  0x4a   :  { %510 = vmatprep.subr.mxu1 %v453_v49  ;;  %1074 = vmatpush3.msra.mxu0 %v567_v15  ;;  %v381_v32 = vrot.slane %v376_v28, %v1799_v27  ;;  %v385_v34 = vrot.slane %v376_v28, %v1804_v29  ;;  %v1059_v28 = vld [vmem:[%s2069_s9] ss:$0 sm:$0xff] }
  0x4b   :  { %511 = vmatpush2.msra.mxu1 %v452_v50  ;;  %1075 = vmatprep.subr.mxu0 %v582_v16 }
  0x4c   :  { %512 = vmatprep.subr.mxu1 %v451_v51  ;;  %1076 = vmatpush3.msra.mxu0 %v566_v17  ;;  %v578_v51 = vld [vmem:[%s2068_s8 + $0xc8] sm:$0xff] }
  0x4d   :  { %513 = vmatpush2.msra.mxu1 %v450_v52  ;;  %1077 = vmatprep.subr.mxu0 %v581_v18  ;;  %v562_v52 = vld [vmem:[%s2068_s8 + $0x48] sm:$0xff] }
  0x4e   :  { %514 = vmatprep.subr.mxu1 %v449_v53  ;;  %1078 = vmatpush3.msra.mxu0 %v565_v19  ;;  %v577_v53 = vld [vmem:[%s2068_s8 + $0xc0] sm:$0xff] }
  0x4f   :  { %515 = vmatpush2.msra.mxu1 %v448_v54  ;;  %1079 = vmatprep.subr.mxu0 %v580_v20  ;;  %v561_v54 = vld [vmem:[%s2068_s8 + $0x40] sm:$0xff] }
  0x50   :  { %516 = vmatprep.subr.mxu1 %v447_v55  ;;  %1080 = vmatpush3.msra.mxu0 %v564_v21  ;;  %v576_v55 = vld [vmem:[%s2068_s8 + $0xb8] sm:$0xff] }
  0x51   :  { %517 = vmatpush2.msra.mxu1 %v446_v56  ;;  %1081 = vmatprep.subr.mxu0 %v579_v22  ;;  %v560_v56 = vld [vmem:[%s2068_s8 + $0x38] sm:$0xff] }
  0x52   :  { %518 = vmatprep.subr.mxu1 %v445_v57  ;;  %1082 = vmatpush3.msra.mxu0 %v563_v23  ;;  %v575_v57 = vld [vmem:[%s2068_s8 + $0xb0] sm:$0xff] }
  0x53   :  { %519 = vmatpush2.msra.mxu1 %v444_v58  ;;  %1083 = vmatprep.subr.mxu0 %v578_v51  ;;  %v559_v58 = vld [vmem:[%s2068_s8 + $0x30] sm:$0xff] }
  0x54   :  { %520 = vmatprep.subr.mxu1 %v443_v59  ;;  %1084 = vmatpush3.msra.mxu0 %v562_v52  ;;  %v574_v59 = vld [vmem:[%s2068_s8 + $0xa8] sm:$0xff] }
  0x55   :  { %521 = vmatpush2.msra.mxu1 %v442_v60  ;;  %1085 = vmatprep.subr.mxu0 %v577_v53  ;;  %v558_v60 = vld [vmem:[%s2068_s8 + $0x28] sm:$0xff]  ;;  %v794_v53 = vld [vmem:[%s2072_s12 + $0x70] sm:$0xff] }
  0x56   :  { %522 = vmatprep.subr.mxu1 %v441_v61  ;;  %1086 = vmatpush3.msra.mxu0 %v561_v54  ;;  %v573_v61 = vld [vmem:[%s2068_s8 + $0xa0] sm:$0xff]  ;;  %v793_v54 = vld [vmem:[%s2072_s12 + $0x68] sm:$0xff] }
  0x57   :  { %523 = vmatpush2.msra.mxu1 %v440_v62  ;;  %1087 = vmatprep.subr.mxu0 %v576_v55  ;;  %v557_v62 = vld [vmem:[%s2068_s8 + $0x20] sm:$0xff] }
  0x58   :  { %524 = vmatprep.subr.mxu1 %v439_v63  ;;  %1088 = vmatpush3.msra.mxu0 %v560_v56  ;;  %v572_v63 = vld [vmem:[%s2068_s8 + $0x98] sm:$0xff]  ;;  %v792_v55 = vld [vmem:[%s2072_s12 + $0x60] sm:$0xff] }
  0x59   :  { %525 = vmatpush2.msra.mxu1 %v438_v0  ;;  %1089 = vmatprep.subr.mxu0 %v575_v57  ;;  %v556_v0 = vld [vmem:[%s2068_s8 + $0x18] sm:$0xff]  ;;  %v790_v57 = vld [vmem:[%s2072_s12 + $0x50] sm:$0xff] }
  0x5a   :  { %526 = vmatprep.subr.mxu1 %v437_v1  ;;  %1090 = vmatpush3.msra.mxu0 %v559_v58  ;;  %v571_v1 = vld [vmem:[%s2068_s8 + $0x90] sm:$0xff]  ;;  %v791_v56 = vld [vmem:[%s2072_s12 + $0x58] sm:$0xff]  ;;  %v789_v58 = vld [vmem:[%s2072_s12 + $0x48] sm:$0xff] }
  0x5b   :  { %527 = vmatpush2.msra.mxu1 %v436_v2  ;;  %1091 = vmatprep.subr.mxu0 %v574_v59  ;;  %v555_v2 = vld [vmem:[%s2068_s8 + $0x10] sm:$0xff]  ;;  %v788_v59 = vld [vmem:[%s2072_s12 + $0x40] sm:$0xff] }
  0x5c   :  { %528 = vmatprep.subr.mxu1 %v435_v3  ;;  %1092 = vmatpush3.msra.mxu0 %v558_v60  ;;  %v570_v3 = vld [vmem:[%s2068_s8 + $0x88] sm:$0xff]  ;;  %v787_v60 = vld [vmem:[%s2072_s12 + $0x38] sm:$0xff] }
  0x5d   :  { %529 = vmatpush2.msra.mxu1 %v434_v5  ;;  %1093 = vmatprep.subr.mxu0 %v573_v61  ;;  %v554_v5 = vld [vmem:[%s2068_s8 + $0x8] sm:$0xff]  ;;  %v786_v61 = vld [vmem:[%s2072_s12 + $0x30] sm:$0xff] }
  0x5e   :  { %530 = vmatprep.subr.mxu1 %v433_v6  ;;  %1094 = vmatpush3.msra.mxu0 %v557_v62  ;;  %v569_v6 = vld [vmem:[%s2068_s8 + $0x80] sm:$0xff]  ;;  %v785_v62 = vld [vmem:[%s2072_s12 + $0x28] sm:$0xff] }
  0x5f   :  { %531 = vmatpush2.msra.mxu1 %v432_v7  ;;  %1095 = vmatprep.subr.mxu0 %v572_v63  ;;  %v553_v7 = vld [vmem:[%s2068_s8] sm:$0xff] }
  0x60   :  { %532 = vmatprep.subr.mxu1 %v431_v8  ;;  %1096 = vmatpush3.msra.mxu0 %v556_v0  ;;  %v784_v63 = vld [vmem:[%s2072_s12 + $0x20] sm:$0xff]  ;;  %v783_v0 = vld [vmem:[%s2072_s12 + $0x18] sm:$0xff] }
  0x61   :  { %533 = vmatpush2.msra.mxu1 %v430_v9  ;;  %1097 = vmatprep.subr.mxu0 %v571_v1  ;;  %v460_v9 = vld [vmem:[%s2067_s7] sm:$0x3]  ;;  %v782_v1 = vld [vmem:[%s2072_s12 + $0x10] sm:$0xff] }
  0x62   :  { %534 = vmatprep.subr.mxu1 %v429_v10  ;;  %1098 = vmatpush3.msra.mxu0 %v555_v2  ;;  %v469_v12 = vrot.slane %v460_v9, %v1804_v29  ;;  %v781_v2 = vld [vmem:[%s2072_s12 + $0x8] sm:$0xff] }
  0x63   :  { %535 = vmatpush2.msra.mxu1 %v428_v11  ;;  %1099 = vmatprep.subr.mxu0 %v570_v3  ;;  %v465_v11 = vrot.slane %v460_v9, %v1799_v27  ;;  %v780_v3 = vld [vmem:[%s2072_s12] sm:$0xff] }
  0x64   :  { %1100 = vmatpush3.msra.mxu0 %v554_v5  ;;  %1136 = vmatprep.subr.mxu1 %v686_v25  ;;  %v911_v5 = vld [vmem:[%s2074_s14 + $0xf8] sm:$0xff]  ;;  %v908_v9 = vld [vmem:[%s2074_s14 + $0xe0] sm:$0xff] }
  0x65   :  { %1101 = vmatprep.subr.mxu0 %v569_v6  ;;  %v910_v6 = vld [vmem:[%s2074_s14 + $0xf0] sm:$0xff] }
  0x66   :  { %1102 = vmatpush3.msra.mxu0 %v553_v7  ;;  %v909_v7 = vld [vmem:[%s2074_s14 + $0xe8] sm:$0xff] }
  0x67   :  { %924 = vmatprep.subr.mxu0 %v911_v5 }
  0xcf   :  { %v149_v26 = vpop.f32.mrf.mxu1 }
  0xd1   :  { %v151_v30 = vpop.f32.mrf.mxu1 }
  0xd3   :  { %v155_v35 = vpop.f32.mrf.mxu1 }
  0xd5   :  { %v157_v42 = vpop.f32.mrf.mxu1 }
  0xd7   :  { %v1868_v8 = vpop.f32.mrf.mxu1 }
  0xd9   :  { %v1873_v10 = vpop.f32.mrf.mxu1 }
 0x104   :  { %v365_v31 = vpop.f32.mrf.mxu0 }
 0x105   :  { %v366_v33 = vadd.f32 %v365_v31, %v149_v26 }
 0x106   :  { %v367_v36 = vpop.f32.mrf.mxu0 }
 0x107   :  { %v368_v37 = vadd.f32 %v367_v36, %v151_v30  ;;  %v388_v38 = vadd.f32 %v381_v32, %v366_v33 }
 0x108   :  { %v371_v39 = vpop.f32.mrf.mxu0 }
 0x109   :  { %v389_v40 = vadd.f32 %v385_v34, %v368_v37  ;;  %v372_v41 = vadd.f32 %v371_v39, %v155_v35 }
 0x10a   :  { %v373_v43 = vpop.f32.mrf.mxu0 }
 0x10b   :  { %1184 = vtanh.f32 %v389_v40  ;;  %v374_v44 = vadd.f32 %v373_v43, %v157_v42  ;;  %v390_v45 = vadd.f32 %v381_v32, %v372_v41  ;;  %v685_v41 = vld [vmem:[%s2070_s10] sm:$0xff]  ;;  %v795_v42 = vld [vmem:[%s2072_s12 + $0x78] sm:$0xff] }
 0x10c   :  { %1186 = vtanh.f32 %v388_v38 }
 0x10d   :  { %v391_v46 = vadd.f32 %v385_v34, %v374_v44 }
 0x10f   :  { %1188 = vtanh.f32 %v391_v46 }
 0x110   :  { %1190 = vtanh.f32 %v390_v45  ;;  %v62_v45 = vld [vmem:[%s2062_s2] sm:$0xff] }
 0x118   :  { %v1185_v47 = vpop.eup %1184 }
 0x119   :  { %v1187_v48 = vpop.eup %1186  ;;  %536 = vmatprep.mubr.f32.mxu1 %v1185_v47 }
 0x11a   :  { %537 = vmatmul.mubr.f32.vlgmr.msra.gmra.mxu1 %v1187_v48  ;;  %v63_v48 = vld [vmem:[%s2062_s2 + $0x8] sm:$0xff] }
 0x11b   :  { %1137 = vmatpush3.msra.mxu1 %v686_v25 }
 0x11c   :  { %v1189_v49 = vpop.eup %1188  ;;  %1138 = vmatprep.subr.mxu1 %v685_v41 }
 0x11d   :  { %v1191_v50 = vpop.eup %1190  ;;  %542 = vmatprep.mubr.f32.mxu1 %v1189_v49  ;;  %1139 = vmatpush3.msra.mxu1 %v685_v41  ;;  %v886_v41 = vld [vmem:[%s2074_s14 + $0x30] sm:$0xff] }
 0x11e   :  { %543 = vmatmul.mubr.f32.gmra.mxu1 %v1191_v50  ;;  %1143 = vmatprep.subr.mxu1 %v795_v42 }
 0x1da   :  { %v538_v13 = vpop.f32.mrf.mxu1 }
 0x1db   :  { %v539_v14 = vadd.f32 %v538_v13, %v465_v11  ;;  %v905_v13 = vld [vmem:[%s2074_s14 + $0xc8] sm:$0xff] }
 0x1dc   :  { %v540_v15 = vpop.f32.mrf.mxu1 }
 0x1dd   :  { %v541_v16 = vadd.f32 %v540_v15, %v469_v12  ;;  %v903_v15 = vld [vmem:[%s2074_s14 + $0xb8] sm:$0xff] }
 0x1de   :  { %v544_v17 = vpop.f32.mrf.mxu1 }
 0x1df   :  { %1192 = vtanh.f32 %v541_v16  ;;  %v545_v18 = vadd.f32 %v544_v17, %v465_v11  ;;  %v907_v11 = vld [vmem:[%s2074_s14 + $0xd8] sm:$0xff]  ;;  %v902_v16 = vld [vmem:[%s2074_s14 + $0xb0] sm:$0xff]  ;;  %v901_v17 = vld [vmem:[%s2074_s14 + $0xa8] sm:$0xff] }
 0x1e0   :  { %1194 = vtanh.f32 %v539_v14  ;;  %v546_v19 = vpop.f32.mrf.mxu1  ;;  %v904_v14 = vld [vmem:[%s2074_s14 + $0xc0] sm:$0xff] }
 0x1e1   :  { %v547_v20 = vadd.f32 %v546_v19, %v469_v12  ;;  %v906_v12 = vld [vmem:[%s2074_s14 + $0xd0] sm:$0xff]  ;;  %v899_v19 = vld [vmem:[%s2074_s14 + $0x98] sm:$0xff] }
 0x1e3   :  { %1196 = vtanh.f32 %v547_v20 }
 0x1e4   :  { %1198 = vtanh.f32 %v545_v18  ;;  %v900_v18 = vld [vmem:[%s2074_s14 + $0xa0] sm:$0xff] }
 0x1ec   :  { %v1193_v21 = vpop.eup %1192 }
 0x1ed   :  { %v1195_v22 = vpop.eup %1194  ;;  %656 = vmatprep.mubr.f32.mxu0 %v1193_v21 }
 0x1ee   :  { %657 = vmatmul.mubr.f32.vlgmr.msra.gmra.mxu0 %v1195_v22  ;;  %v1062_v22 = vld [vmem:[%s2071_s11] ss:$0 sm:$0xff] }
 0x1ef   :  { %925 = vmatpush1.msra.mxu0 %v910_v6 }
 0x1f0   :  { %v1197_v23 = vpop.eup %1196  ;;  %926 = vmatprep.subr.mxu0 %v909_v7 }
 0x1f1   :  { %v1199_v24 = vpop.eup %1198  ;;  %661 = vmatprep.mubr.f32.mxu0 %v1197_v23  ;;  %927 = vmatpush1.msra.mxu0 %v908_v9 }
 0x1f2   :  { %662 = vmatmul.mubr.f32.gmra.mxu0 %v1199_v24  ;;  %928 = vmatprep.subr.mxu0 %v907_v11 }
 0x1f3   :  { %988 = vmatprep.mubr.f32.mxu0 %v1250_v4  ;;  %929 = vmatpush1.msra.mxu0 %v906_v12 }
 0x1f4   :  { %930 = vmatprep.subr.mxu0 %v905_v13 }
 0x1f5   :  { %931 = vmatpush1.msra.mxu0 %v904_v14 }
 0x1f6   :  { %932 = vmatprep.subr.mxu0 %v903_v15 }
 0x1f7   :  { %933 = vmatpush1.msra.mxu0 %v902_v16 }
 0x1f8   :  { %934 = vmatprep.subr.mxu0 %v901_v17 }
 0x1f9   :  { %935 = vmatpush1.msra.mxu0 %v900_v18 }
 0x1fa   :  { %936 = vmatprep.subr.mxu0 %v899_v19 }
 0x2ae   :  { %v1103_v26 = vpop.f32.mrf.mxu0 }
 0x2b0   :  { %v1104_v30 = vpop.f32.mrf.mxu0 }
 0x2b1   :  { %v1105_v31 = vadd.f32 %v1104_v30, %v1103_v26 }
 0x2b2   :  { %v1106_v32 = vpop.f32.mrf.mxu0 }
 0x2b3   :  { %v659_v33 = vadd.f32 %v1105_v31, %v1059_v28  ;;  %v898_v31 = vld [vmem:[%s2074_s14 + $0x90] sm:$0xff] }
 0x2b4   :  { %v1107_v34 = vpop.f32.mrf.mxu0  ;;  %937 = vmatpush1.msra.mxu0 %v898_v31 }
 0x2b5   :  { %v667_v35 = vmul.f32 0.5, %v659_v33  ;;  %1030 = vst.msk [vmem:[%s2077_s17] sm:$0xff] %vm1029_vm2, %v659_v33  ;;  %v1108_v36 = vadd.f32 %v1107_v34, %v1106_v32  ;;  %v895_v32 = vld [vmem:[%s2074_s14 + $0x78] sm:$0xff]  ;;  %v893_v34 = vld [vmem:[%s2074_s14 + $0x68] sm:$0xff] }
 0x2b7   :  { %v669_v37 = vmul.f32 1.442695, %v667_v35  ;;  %v664_v38 = vadd.f32 %v1108_v36, %v1059_v28  ;;  %v892_v35 = vld [vmem:[%s2074_s14 + $0x60] sm:$0xff]  ;;  %v891_v36 = vld [vmem:[%s2074_s14 + $0x58] sm:$0xff] }
 0x2b9   :  { %1200 = vpow2.f32 %v669_v37  ;;  %v668_v39 = vmul.f32 0.5, %v664_v38  ;;  %1031 = vst.msk [vmem:[%s2077_s17 + $0x8] sm:$0xff] %vm1029_vm2, %v664_v38  ;;  %v890_v37 = vld [vmem:[%s2074_s14 + $0x50] sm:$0xff] }
 0x2bb   :  { %v671_v40 = vmul.f32 1.442695, %v668_v39  ;;  %v888_v39 = vld [vmem:[%s2074_s14 + $0x40] sm:$0xff] }
 0x2bd   :  { %1202 = vpow2.f32 %v671_v40  ;;  %v887_v40 = vld [vmem:[%s2074_s14 + $0x38] sm:$0xff] }
 0x2c6   :  { %v1201_v43 = vpop.eup %1200 }
 0x2c7   :  { %675 = vrot.lane.b32.xlu0 %v1201_v43, %s1251_s24  ;;  %v884_v43 = vld [vmem:[%s2074_s14 + $0x20] sm:$0xff] }
 0x2ca   :  { %v1203_v44 = vpop.eup %1202 }
 0x2cb   :  { %677 = vrot.lane.b32.xlu0 %v1203_v44, %s1251_s24  ;;  %v883_v44 = vld [vmem:[%s2074_s14 + $0x18] sm:$0xff] }
 0x339   :  { %v676_v46 = vpop.permute.xlu0 %675 }
 0x33a   :  { %v681_v47 = vmul.f32 %v676_v46, %v62_v45  ;;  %v882_v45 = vld [vmem:[%s2074_s14 + $0x10] sm:$0xff]  ;;  %v881_v46 = vld [vmem:[%s2074_s14 + $0x8] sm:$0xff] }
 0x33c   :  { %v683_v49 = vadd.f32 %v681_v47, %v659_v33  ;;  %v894_v33 = vld [vmem:[%s2074_s14 + $0x70] sm:$0xff]  ;;  %v880_v47 = vld [vmem:[%s2074_s14] sm:$0xff] }
 0x33d   :  { %v678_v50 = vpop.permute.xlu0 %677 }
 0x33e   :  { %v682_v51 = vmul.f32 %v678_v50, %v63_v48  ;;  %1140 = vmatprep.mubr.msk.f32.mxu1 %vm687_vm3, %v683_v49  ;;  %v1063_v49 = vld [vmem:[%s2073_s13] ss:$0 sm:$0xff]  ;;  %s1252_s13 = smov [#allocation2]  }
 0x340   :  { %v684_v52 = vadd.f32 %v682_v51, %v664_v38  ;;  %v889_v38 = vld [vmem:[%s2074_s14 + $0x48] sm:$0xff] }
 0x342   :  { %1141 = vmatmul.mubr.msk.f32.vlgmr.msra.gmra.mxu1 %vm687_vm3, %v684_v52 }
 0x343   :  { %1144 = vmatpush3.msra.mxu1 %v795_v42  ;;  %v885_v42 = vld [vmem:[%s2074_s14 + $0x28] sm:$0xff] }
 0x344   :  { %1145 = vmatprep.subr.mxu1 %v794_v53 }
 0x345   :  { %1146 = vmatpush3.msra.mxu1 %v794_v53 }
 0x346   :  { %1147 = vmatprep.subr.mxu1 %v793_v54 }
 0x347   :  { %1148 = vmatpush3.msra.mxu1 %v793_v54 }
 0x348   :  { %1149 = vmatprep.subr.mxu1 %v792_v55 }
 0x349   :  { %1150 = vmatpush3.msra.mxu1 %v792_v55  ;;  %v912_v55 = vld [vmem:[%s2075_s15] sm:$0x3]  ;;  %s1037_s15 = sshll.u32 %s1252_s13, 4  ;;  %s1038_s15 = int_to_ptr.vmem [resolvable:$true] %s1037_s15 }
 0x34a   :  { %1151 = vmatprep.subr.mxu1 %v791_v56  ;;  %s1228_s4 = scalar_lea.vmem %s1038_s15, 512  ;;  %p1233_p1 = scmp.lt.s32.totalorder %s1038_s15, %s1038_s15 }
 0x34b   :  { %1152 = vmatpush3.msra.mxu1 %v791_v56  ;;  %v917_v56 = vrot.slane %v912_v55, %v1799_v27  ;;  %p1229_p0 = scmp.ne.s32.totalorder %s1038_s15, %s1228_s4  ;;  %p1234_p2 = scmp.lt.s32.totalorder %s1228_s4, %s1228_s4 }
 0x34c   :  { %1153 = vmatprep.subr.mxu1 %v790_v57 }
 0x34d   :  { %1154 = vmatpush3.msra.mxu1 %v790_v57  ;;  %v921_v57 = vrot.slane %v912_v55, %v1804_v29  ;;  %p1235_p3 = por %p1234_p2, %p1233_p1 }
 0x34e   :  { %1155 = vmatprep.subr.mxu1 %v789_v58 }
 0x34f   :  { %1156 = vmatpush3.msra.mxu1 %v789_v58  ;;  %p1236_p4 = pnand %p1235_p3, %p1229_p0 }
 0x350   :  { %1157 = vmatprep.subr.mxu1 %v788_v59 }
 0x351   :  { %1158 = vmatpush3.msra.mxu1 %v788_v59 }
 0x352   :  { %1159 = vmatprep.subr.mxu1 %v787_v60 }
 0x353   :  { %1160 = vmatpush3.msra.mxu1 %v787_v60 }
 0x354   :  { %1161 = vmatprep.subr.mxu1 %v786_v61 }
 0x355   :  { %1162 = vmatpush3.msra.mxu1 %v786_v61 }
 0x356   :  { %1163 = vmatprep.subr.mxu1 %v785_v62 }
 0x357   :  { %1164 = vmatpush3.msra.mxu1 %v785_v62 }
 0x358   :  { %1165 = vmatprep.subr.mxu1 %v784_v63 }
 0x359   :  { %1166 = vmatpush3.msra.mxu1 %v784_v63 }
 0x35a   :  { %1167 = vmatprep.subr.mxu1 %v783_v0 }
 0x35b   :  { %1168 = vmatpush3.msra.mxu1 %v783_v0 }
 0x35c   :  { %1169 = vmatprep.subr.mxu1 %v782_v1 }
 0x35d   :  { %1170 = vmatpush3.msra.mxu1 %v782_v1 }
 0x35e   :  { %1171 = vmatprep.subr.mxu1 %v781_v2 }
 0x35f   :  { %1172 = vmatpush3.msra.mxu1 %v781_v2 }
 0x360   :  { %1173 = vmatprep.subr.mxu1 %v780_v3 }
 0x361   :  { %1174 = vmatpush3.msra.mxu1 %v780_v3 }
 0x402   :  { %v1142_v20 = vpop.f32.mrf.mxu1 }
 0x403   :  { %v766_v21 = vadd.f32 %v1142_v20, %v1868_v8  ;;  %v897_v8 = vld [vmem:[%s2074_s14 + $0x88] sm:$0xff] }
 0x404   :  { %v760_v23 = vpop.f32.mrf.mxu1  ;;  %938 = vmatprep.subr.mxu0 %v897_v8 }
 0x405   :  { %v761_v24 = vadd.f32 %v760_v23, %v1873_v10  ;;  %v777_v25 = vadd.f32 %v1062_v22, %v766_v21  ;;  %v896_v10 = vld [vmem:[%s2074_s14 + $0x80] sm:$0xff] }
 0x406   :  { %939 = vmatpush1.msra.mxu0 %v896_v10 }
 0x407   :  { %v776_v26 = vadd.f32 %v1062_v22, %v761_v24  ;;  %940 = vmatprep.subr.mxu0 %v895_v32 }
 0x408   :  { %941 = vmatpush1.msra.mxu0 %v894_v33 }
 0x409   :  { %1204 = vtanh.f32 %v776_v26  ;;  %942 = vmatprep.subr.mxu0 %v893_v34 }
 0x40a   :  { %1206 = vtanh.f32 %v777_v25  ;;  %943 = vmatpush1.msra.mxu0 %v892_v35 }
 0x40b   :  { %944 = vmatprep.subr.mxu0 %v891_v36 }
 0x40c   :  { %945 = vmatpush1.msra.mxu0 %v890_v37 }
 0x40d   :  { %946 = vmatprep.subr.mxu0 %v889_v38 }
 0x40e   :  { %947 = vmatpush1.msra.mxu0 %v888_v39 }
 0x40f   :  { %948 = vmatprep.subr.mxu0 %v887_v40 }
 0x410   :  { %949 = vmatpush1.msra.mxu0 %v886_v41 }
 0x411   :  { %950 = vmatprep.subr.mxu0 %v885_v42 }
 0x412   :  { %951 = vmatpush1.msra.mxu0 %v884_v43 }
 0x413   :  { %952 = vmatprep.subr.mxu0 %v883_v44 }
 0x414   :  { %953 = vmatpush1.msra.mxu0 %v882_v45 }
 0x415   :  { %954 = vmatprep.subr.mxu0 %v881_v46 }
 0x416   :  { %v1205_v28 = vpop.eup %1204  ;;  %955 = vmatpush1.msra.mxu0 %v880_v47 }
 0x417   :  { %v1207_v30 = vpop.eup %1206  ;;  %1175 = vmatprep.mubr.f32.mxu1 %v1205_v28 }
 0x418   :  { %1176 = vmatmul.mubr.f32.vlgmr.msra.gmra.mxu1 %v1207_v30 }
 0x4d8   :  { %v1177_v48 = vpop.f32.mrf.mxu1 }
 0x4d9   :  { %v875_v52 = vadd.f32 %v1177_v48, %v1063_v49 }
 0x4da   :  { %v869_v50 = vpop.f32.mrf.mxu1 }
 0x4db   :  { %v870_v51 = vadd.f32 %v1063_v49, %v869_v50 }
 0x4dd   :  { %1208 = vtanh.f32 %v870_v51 }
 0x4de   :  { %1210 = vtanh.f32 %v875_v52 }
 0x4ea   :  { %v1209_v53 = vpop.eup %1208 }
 0x4eb   :  { %989 = vmatmul.mubr.f32.vlgmr.msra.gmra.mxu0 %v1209_v53  ;;  %v1211_v54 = vpop.eup %1210 }
 0x4ec   :  { %994 = vmatprep.mubr.f32.mxu0 %v1250_v4 }
 0x4ef   :  { %995 = vmatmul.mubr.f32.gmra.mxu0 %v1211_v54 }
 0x5ab   :  { %v990_v58 = vpop.f32.mrf.mxu0 }
 0x5ac   :  { %v991_v59 = vadd.f32 %v990_v58, %v917_v56 }
 0x5ad   :  { %v992_v60 = vpop.f32.mrf.mxu0 }
 0x5ae   :  { %v1064_v61 = vmul.f32 -1.442695, %v991_v59  ;;  %v993_v62 = vadd.f32 %v992_v60, %v921_v57 }
 0x5af   :  { %v996_v63 = vpop.f32.mrf.mxu0 }
 0x5b0   :  { %1212 = vpow2.f32 %v1064_v61  ;;  %v1065_v0 = vmul.f32 -1.442695, %v993_v62  ;;  %v997_v1 = vadd.f32 %v996_v63, %v917_v56 }
 0x5b1   :  { %v998_v4 = vpop.f32.mrf.mxu0 }
 0x5b2   :  { %1214 = vpow2.f32 %v1065_v0  ;;  %v1066_v2 = vmul.f32 -1.442695, %v997_v1  ;;  %v999_v3 = vadd.f32 %v998_v4, %v921_v57 }
 0x5b4   :  { %1216 = vpow2.f32 %v1066_v2  ;;  %v1067_v5 = vmul.f32 -1.442695, %v999_v3 }
 0x5b6   :  { %1218 = vpow2.f32 %v1067_v5 }
 0x5bd   :  { %v1213_v6 = vpop.eup %1212 }
 0x5be   :  { %v1013_v27 = vadd.f32 1.0, %v1213_v6 }
 0x5bf   :  { %v1215_v7 = vpop.eup %1214 }
 0x5c0   :  { %1220 = vrcp.f32 %v1013_v27  ;;  %v1014_v29 = vadd.f32 1.0, %v1215_v7 }
 0x5c1   :  { %v1217_v9 = vpop.eup %1216 }
 0x5c2   :  { %1222 = vrcp.f32 %v1014_v29  ;;  %v1015_v11 = vadd.f32 1.0, %v1217_v9 }
 0x5c3   :  { %v1219_v12 = vpop.eup %1218 }
 0x5c4   :  { %1224 = vrcp.f32 %v1015_v11  ;;  %v1016_v13 = vadd.f32 1.0, %v1219_v12 }
 0x5c6   :  { %1226 = vrcp.f32 %v1016_v13 }
 0x5cd   :  { %v1221_v14 = vpop.eup %1220 }
 0x5ce   :  { %1025 = vst [vmem:[#allocation2] sm:$0xff] %v1221_v14 }
 0x5cf   :  { %v1223_v15 = vpop.eup %1222 }
 0x5d0   :  { %1026 = vst [vmem:[#allocation2 + $0x8] sm:$0xff] %v1223_v15 }
 0x5d1   :  { %v1225_v16 = vpop.eup %1224 }
 0x5d2   :  { %1027 = vst [vmem:[#allocation2 + $0x10] sm:$0xff] %v1225_v16 }
 0x5d3   :  { %v1227_v17 = vpop.eup %1226 }
 0x5d4   :  { %1028 = vst [vmem:[#allocation2 + $0x18] sm:$0xff] %v1227_v17 }
 0x5d5   :  { %1239 = shalt.err (!%p1236_p4)
}
 0x5d6   :  { %s1253_s24 = smov 256   ;;  %s1254_s23 = smov 16  }
 0x5d7   :  { %1043 = dma.vmem_to_hbm [thread:$0]  %s1038_s15, 512, %s2076_s16, [#allocation3], %s1253_s24, %s1253_s24, %s1254_s23  }
 0x5d8   :  { %1248 = dma.done.wait [#allocation3], 512  }
 0x5d9   :  { %1249 = vsyncadd [#allocation3], 4294966784 }
 0x5da   :  { %1051 = vsyncpa [#allocation3], 1 }

</bundles_post_ra>
